<compile_context>
chip_gen: v6e
topology: v6e:2x2x1
jax: 0.10.0
libtpu: 0.0.40
codegen_flags: <defaults>
</compile_context>

<pallas_src>
import jax
import jax.numpy as jnp
from jax.experimental import pallas as pl
from jax.experimental.pallas import tpu as pltpu


def _make_liquid_kernel(alpha):
    one_minus_alpha = 1.0 - float(alpha)

    def kernel(h0_ref, x_ref, w_ref, u_ref, b_ref, out_ref):
        T = x_ref.shape[0]

        # Weights / bias are VMEM-resident for the whole call; load once.
        w = w_ref[...]            # (H, H)   compute dtype
        u = u_ref[...]            # (H, I)   compute dtype
        bias = b_ref[...]         # (H, Bb)  f32, pre-broadcast on host

        # Carried hidden state stays in f32 vregs across the whole time loop.
        h0 = h0_ref[...].astype(jnp.float32)

        def step(t, h):
            x_t = x_ref[t]        # (I, Bb), dynamic first-axis index into VMEM
            z = jnp.dot(w, h.astype(w.dtype), preferred_element_type=jnp.float32)
            z = z + jnp.dot(u, x_t, preferred_element_type=jnp.float32)
            z = z + bias
            # Folded update: (1 - alpha) * h + tanh(z), all f32 on VPU/EUP.
            return one_minus_alpha * h + jnp.tanh(z)

        h_final = jax.lax.fori_loop(0, T, step, h0, unroll=(T <= 16))

        # Single lane-dense store of the final state.
        out_ref[...] = h_final.astype(out_ref.dtype)

    return kernel


def prepare_liquid_params(W, U, b, compute_dtype=jnp.float32):
    """One-time parameter prep (kept out of the hot path)."""
    W_c = W.astype(compute_dtype)                      # (H, H)
    U_c = U.astype(compute_dtype)                      # (H, I)
    b_col = b.reshape(-1, 1).astype(jnp.float32)       # (H, 1)
    return W_c, U_c, b_col


def liquid_neuron_scan(h0, x_seq, W_c, U_c, b_col, *, alpha=0.1, block_b=256,
                       vmem_limit_bytes=None):
    """Run T fused LiquidNeuron steps on a batch of states.

    h0:    (H, B)     initial hidden states (columns = batch)
    x_seq: (T, I, B)  inputs per step
    W_c:   (H, H)     recurrent weights, compute dtype
    U_c:   (H, I)     input weights, compute dtype
    b_col: (H, 1)     bias column (f32)
    returns final hidden states, (H, B) f32.
    """
    H, B = h0.shape
    T, I, Bx = x_seq.shape
    assert Bx == B and W_c.shape == (H, H) and U_c.shape == (H, I)
    assert b_col.shape == (H, 1)

    block_b = max(128, int(block_b))
    B_pad = -(-B // block_b) * block_b

    h0_p = h0.astype(jnp.float32)
    x_p = x_seq.astype(W_c.dtype)          # stream x in the compute dtype
    if B_pad != B:
        h0_p = jnp.pad(h0_p, ((0, 0), (0, B_pad - B)))
        x_p = jnp.pad(x_p, ((0, 0), (0, 0), (0, B_pad - B)))

    # Pre-broadcast the bias once on the host (no per-step lane broadcast).
    b_bcast = jnp.broadcast_to(b_col.astype(jnp.float32), (H, block_b))

    # TODO(synk): chunk T (second "arbitrary" grid axis carrying h in a VMEM
    # scratch) if T*I*block_b bytes ever exceeds the per-core VMEM budget.
    itemsize = jnp.dtype(W_c.dtype).itemsize
    needed = (2 * T * I * block_b * itemsize        # bulk x block (double buffered)
              + 2 * H * block_b * 4                 # h0 block
              + 2 * H * (H + I) * itemsize          # W + U
              + 2 * H * block_b * 4                 # bias
              + 2 * H * block_b * 4)                # out block
    if vmem_limit_bytes is None:
        vmem_limit_bytes = min(max(2 * needed, 32 << 20), 64 << 20)

    grid = (B_pad // block_b,)

    out = pl.pallas_call(
        _make_liquid_kernel(alpha),
        out_shape=jax.ShapeDtypeStruct((H, B_pad), jnp.float32),
        grid_spec=pltpu.PrefetchScalarGridSpec(
            num_scalar_prefetch=0,
            grid=grid,
            in_specs=[
                # h0: one block per batch block.
                pl.BlockSpec((H, block_b), lambda bi: (0, bi)),
                # x: whole T axis bulk-loaded per batch block.
                pl.BlockSpec((T, I, block_b), lambda bi: (0, 0, bi)),
                # Weights: constant index_map -> DMA'd to VMEM once, resident.
                pl.BlockSpec((H, H), lambda bi: (0, 0)),
                pl.BlockSpec((H, I), lambda bi: (0, 0)),
                # Pre-broadcast bias tile: constant index_map.
                pl.BlockSpec((H, block_b), lambda bi: (0, 0)),
            ],
            out_specs=pl.BlockSpec((H, block_b), lambda bi: (0, bi)),
        ),
        compiler_params=pltpu.CompilerParams(
            dimension_semantics=("parallel",),
            vmem_limit_bytes=int(vmem_limit_bytes),
        ),
    )(h0_p, x_p, W_c, U_c, b_bcast)

    return out[:, :B]


def liquid_neuron_step(h, x, W, U, b, *, alpha=0.1, compute_dtype=jnp.float32):
    """Exact LiquidNeuron.forward interface: h (H,), x (I,) -> (H,).
    (The single vector is padded to one lane-dense 128-wide block; for real
    workloads use liquid_neuron_scan with a batch / time sequence.)"""
    H, = h.shape
    I, = x.shape
    W_c, U_c, b_col = prepare_liquid_params(W, U, b, compute_dtype)
    out = liquid_neuron_scan(h.reshape(H, 1), x.reshape(1, I, 1),
                             W_c, U_c, b_col, alpha=alpha, block_b=128)
    return out[:, 0]


# ---------------------------------------------------------------------------
# Pure-JAX references.
# ---------------------------------------------------------------------------
def liquid_neuron_ref_step(h, x, W, U, b, alpha=0.1):
    dh = -alpha * h + jnp.tanh(W @ h + U @ x + b)
    return h + dh


def liquid_neuron_ref_scan(h0, x_seq, W, U, b, alpha=0.1):
    def step(h, x):
        z = W @ h + U @ x + b[:, None]
        return (1.0 - alpha) * h + jnp.tanh(z), None

    h_final, _ = jax.lax.scan(step, h0, x_seq)
    return h_final


if __name__ == "__main__":
    hidden_size, input_size = 32, 16
    batch, steps = 256, 8
    alpha = 0.1

    key = jax.random.PRNGKey(0)
    k_w, k_u, k_h, k_x = jax.random.split(key, 4)

    W = 0.1 * jax.random.normal(k_w, (hidden_size, hidden_size), dtype=jnp.float32)
    U = 0.1 * jax.random.normal(k_u, (hidden_size, input_size), dtype=jnp.float32)
    b = jnp.zeros((hidden_size,), dtype=jnp.float32)

    h0 = jax.random.normal(k_h, (hidden_size, batch), dtype=jnp.float32)
    x_seq = jax.random.normal(k_x, (steps, input_size, batch), dtype=jnp.float32)

    ref = liquid_neuron_ref_scan(h0, x_seq, W, U, b, alpha)

    # 1) f32 weights, block_b=128 (two batch blocks -> exercises the parallel
    #    grid axis): tight numerical check.
    W32, U32, bcol = prepare_liquid_params(W, U, b, jnp.float32)
    out_f32 = jax.block_until_ready(
        liquid_neuron_scan(h0, x_seq, W32, U32, bcol, alpha=alpha, block_b=128))
    assert out_f32.shape == (hidden_size, batch)
    assert jnp.allclose(out_f32, ref, atol=1e-5, rtol=1e-5), "f32 mismatch vs reference"

    # 2) bf16 weights + bf16 streamed x (MXU-native), f32 accumulate + update,
    #    default block_b=256 (single wide block).
    W16, U16, bcol16 = prepare_liquid_params(W, U, b, jnp.bfloat16)
    out_bf16 = jax.block_until_ready(
        liquid_neuron_scan(h0, x_seq, W16, U16, bcol16, alpha=alpha))
    assert jnp.allclose(out_bf16, ref, atol=5e-2, rtol=5e-2), "bf16 mismatch vs reference"

    # 3) Single-step, single-vector interface == the original module forward.
    h1, x1 = h0[:, 0], x_seq[0, :, 0]
    out_step = jax.block_until_ready(
        liquid_neuron_step(h1, x1, W, U, b, alpha=alpha))
    ref_step = liquid_neuron_ref_step(h1, x1, W, U, b, alpha)
    assert out_step.shape == (hidden_size,)
    assert jnp.allclose(out_step, ref_step, atol=1e-5, rtol=1e-5), "step mismatch vs reference"

    print("KERNEL_OK")
</pallas_src>

<mosaic_0001>
module attributes {stable_mosaic.version = 11 : i64} {
  func.func @kernel(%arg0: i32, %arg1: memref<32x128xf32, #tpu.memory_space<vmem>>, %arg2: memref<8x16x128xf32, #tpu.memory_space<vmem>>, %arg3: memref<32x32xf32, #tpu.memory_space<vmem>>, %arg4: memref<32x16xf32, #tpu.memory_space<vmem>>, %arg5: memref<32x128xf32, #tpu.memory_space<vmem>>, %arg6: memref<32x128xf32, #tpu.memory_space<vmem>>) attributes {dimension_semantics = [#tpu.dimension_semantics<parallel>], iteration_bounds = array<i64: 2>, scalar_prefetch = 0 : i64, scratch_operands = 0 : i64, tpu.core_type = #tpu.core_type<tc>, window_params = [{transform_indices = @transform_0, window_bounds = array<i64: 32, 128>}, {transform_indices = @transform_1, window_bounds = array<i64: 8, 16, 128>}, {pipeline_mode = #tpu.pipeline_mode<synchronous>, transform_indices = @transform_2, window_bounds = array<i64: 32, 32>}, {pipeline_mode = #tpu.pipeline_mode<synchronous>, transform_indices = @transform_3, window_bounds = array<i64: 32, 16>}, {pipeline_mode = #tpu.pipeline_mode<synchronous>, transform_indices = @transform_4, window_bounds = array<i64: 32, 128>}, {transform_indices = @transform_5, window_bounds = array<i64: 32, 128>}]} {
    %c0 = arith.constant 0 : index
    %c0_0 = arith.constant 0 : index
    %0 = vector.load %arg3[%c0, %c0_0] : memref<32x32xf32, #tpu.memory_space<vmem>>, vector<32x32xf32>
    %c0_1 = arith.constant 0 : index
    %c0_2 = arith.constant 0 : index
    %1 = vector.load %arg4[%c0_1, %c0_2] : memref<32x16xf32, #tpu.memory_space<vmem>>, vector<32x16xf32>
    %c0_3 = arith.constant 0 : index
    %c0_4 = arith.constant 0 : index
    %2 = vector.load %arg5[%c0_3, %c0_4] : memref<32x128xf32, #tpu.memory_space<vmem>>, vector<32x128xf32>
    %c0_5 = arith.constant 0 : index
    %c0_6 = arith.constant 0 : index
    %3 = vector.load %arg1[%c0_5, %c0_6] : memref<32x128xf32, #tpu.memory_space<vmem>>, vector<32x128xf32>
    %c0_i32 = arith.constant 0 : i32
    %4 = arith.index_cast %c0_i32 : i32 to index
    %c0_7 = arith.constant 0 : index
    %c0_8 = arith.constant 0 : index
    %5 = vector.load %arg2[%4, %c0_7, %c0_8] : memref<8x16x128xf32, #tpu.memory_space<vmem>>, vector<1x16x128xf32>
    %6 = vector.shape_cast %5 : vector<1x16x128xf32> to vector<16x128xf32>
    %cst = arith.constant dense<0.000000e+00> : vector<32x128xf32>
    %7 = tpu.matmul %0, %3, %cst {dimension_numbers = #tpu.dot_dimension_numbers<[1], [0], [0], [1], [0, 0, 1, 1], [], []>} : vector<32x32xf32>, vector<32x128xf32>, vector<32x128xf32> -> vector<32x128xf32>
    %cst_9 = arith.constant dense<0.000000e+00> : vector<32x128xf32>
    %8 = tpu.matmul %1, %6, %cst_9 {dimension_numbers = #tpu.dot_dimension_numbers<[1], [0], [0], [1], [0, 0, 1, 1], [], []>} : vector<32x16xf32>, vector<16x128xf32>, vector<32x128xf32> -> vector<32x128xf32>
    %9 = arith.addf %7, %8 : vector<32x128xf32>
    %10 = arith.addf %9, %2 : vector<32x128xf32>
    %cst_10 = arith.constant 0.899999976 : f32
    %11 = vector.broadcast %cst_10 : f32 to vector<32x128xf32>
    %12 = arith.mulf %11, %3 : vector<32x128xf32>
    %13 = math.tanh %10 : vector<32x128xf32>
    %14 = arith.addf %12, %13 : vector<32x128xf32>
    %c1_i32 = arith.constant 1 : i32
    %15 = arith.index_cast %c1_i32 : i32 to index
    %c0_11 = arith.constant 0 : index
    %c0_12 = arith.constant 0 : index
    %16 = vector.load %arg2[%15, %c0_11, %c0_12] : memref<8x16x128xf32, #tpu.memory_space<vmem>>, vector<1x16x128xf32>
    %17 = vector.shape_cast %16 : vector<1x16x128xf32> to vector<16x128xf32>
    %cst_13 = arith.constant dense<0.000000e+00> : vector<32x128xf32>
    %18 = tpu.matmul %0, %14, %cst_13 {dimension_numbers = #tpu.dot_dimension_numbers<[1], [0], [0], [1], [0, 0, 1, 1], [], []>} : vector<32x32xf32>, vector<32x128xf32>, vector<32x128xf32> -> vector<32x128xf32>
    %cst_14 = arith.constant dense<0.000000e+00> : vector<32x128xf32>
    %19 = tpu.matmul %1, %17, %cst_14 {dimension_numbers = #tpu.dot_dimension_numbers<[1], [0], [0], [1], [0, 0, 1, 1], [], []>} : vector<32x16xf32>, vector<16x128xf32>, vector<32x128xf32> -> vector<32x128xf32>
    %20 = arith.addf %18, %19 : vector<32x128xf32>
    %21 = arith.addf %20, %2 : vector<32x128xf32>
    %cst_15 = arith.constant 0.899999976 : f32
    %22 = vector.broadcast %cst_15 : f32 to vector<32x128xf32>
    %23 = arith.mulf %22, %14 : vector<32x128xf32>
    %24 = math.tanh %21 : vector<32x128xf32>
    %25 = arith.addf %23, %24 : vector<32x128xf32>
    %c2_i32 = arith.constant 2 : i32
    %26 = arith.index_cast %c2_i32 : i32 to index
    %c0_16 = arith.constant 0 : index
    %c0_17 = arith.constant 0 : index
    %27 = vector.load %arg2[%26, %c0_16, %c0_17] : memref<8x16x128xf32, #tpu.memory_space<vmem>>, vector<1x16x128xf32>
    %28 = vector.shape_cast %27 : vector<1x16x128xf32> to vector<16x128xf32>
    %cst_18 = arith.constant dense<0.000000e+00> : vector<32x128xf32>
    %29 = tpu.matmul %0, %25, %cst_18 {dimension_numbers = #tpu.dot_dimension_numbers<[1], [0], [0], [1], [0, 0, 1, 1], [], []>} : vector<32x32xf32>, vector<32x128xf32>, vector<32x128xf32> -> vector<32x128xf32>
    %cst_19 = arith.constant dense<0.000000e+00> : vector<32x128xf32>
    %30 = tpu.matmul %1, %28, %cst_19 {dimension_numbers = #tpu.dot_dimension_numbers<[1], [0], [0], [1], [0, 0, 1, 1], [], []>} : vector<32x16xf32>, vector<16x128xf32>, vector<32x128xf32> -> vector<32x128xf32>
    %31 = arith.addf %29, %30 : vector<32x128xf32>
    %32 = arith.addf %31, %2 : vector<32x128xf32>
    %cst_20 = arith.constant 0.899999976 : f32
    %33 = vector.broadcast %cst_20 : f32 to vector<32x128xf32>
    %34 = arith.mulf %33, %25 : vector<32x128xf32>
    %35 = math.tanh %32 : vector<32x128xf32>
    %36 = arith.addf %34, %35 : vector<32x128xf32>
    %c3_i32 = arith.constant 3 : i32
    %37 = arith.index_cast %c3_i32 : i32 to index
    %c0_21 = arith.constant 0 : index
    %c0_22 = arith.constant 0 : index
    %38 = vector.load %arg2[%37, %c0_21, %c0_22] : memref<8x16x128xf32, #tpu.memory_space<vmem>>, vector<1x16x128xf32>
    %39 = vector.shape_cast %38 : vector<1x16x128xf32> to vector<16x128xf32>
    %cst_23 = arith.constant dense<0.000000e+00> : vector<32x128xf32>
    %40 = tpu.matmul %0, %36, %cst_23 {dimension_numbers = #tpu.dot_dimension_numbers<[1], [0], [0], [1], [0, 0, 1, 1], [], []>} : vector<32x32xf32>, vector<32x128xf32>, vector<32x128xf32> -> vector<32x128xf32>
    %cst_24 = arith.constant dense<0.000000e+00> : vector<32x128xf32>
    %41 = tpu.matmul %1, %39, %cst_24 {dimension_numbers = #tpu.dot_dimension_numbers<[1], [0], [0], [1], [0, 0, 1, 1], [], []>} : vector<32x16xf32>, vector<16x128xf32>, vector<32x128xf32> -> vector<32x128xf32>
    %42 = arith.addf %40, %41 : vector<32x128xf32>
    %43 = arith.addf %42, %2 : vector<32x128xf32>
    %cst_25 = arith.constant 0.899999976 : f32
    %44 = vector.broadcast %cst_25 : f32 to vector<32x128xf32>
    %45 = arith.mulf %44, %36 : vector<32x128xf32>
    %46 = math.tanh %43 : vector<32x128xf32>
    %47 = arith.addf %45, %46 : vector<32x128xf32>
    %c4_i32 = arith.constant 4 : i32
    %48 = arith.index_cast %c4_i32 : i32 to index
    %c0_26 = arith.constant 0 : index
    %c0_27 = arith.constant 0 : index
    %49 = vector.load %arg2[%48, %c0_26, %c0_27] : memref<8x16x128xf32, #tpu.memory_space<vmem>>, vector<1x16x128xf32>
    %50 = vector.shape_cast %49 : vector<1x16x128xf32> to vector<16x128xf32>
    %cst_28 = arith.constant dense<0.000000e+00> : vector<32x128xf32>
    %51 = tpu.matmul %0, %47, %cst_28 {dimension_numbers = #tpu.dot_dimension_numbers<[1], [0], [0], [1], [0, 0, 1, 1], [], []>} : vector<32x32xf32>, vector<32x128xf32>, vector<32x128xf32> -> vector<32x128xf32>
    %cst_29 = arith.constant dense<0.000000e+00> : vector<32x128xf32>
    %52 = tpu.matmul %1, %50, %cst_29 {dimension_numbers = #tpu.dot_dimension_numbers<[1], [0], [0], [1], [0, 0, 1, 1], [], []>} : vector<32x16xf32>, vector<16x128xf32>, vector<32x128xf32> -> vector<32x128xf32>
    %53 = arith.addf %51, %52 : vector<32x128xf32>
    %54 = arith.addf %53, %2 : vector<32x128xf32>
    %cst_30 = arith.constant 0.899999976 : f32
    %55 = vector.broadcast %cst_30 : f32 to vector<32x128xf32>
    %56 = arith.mulf %55, %47 : vector<32x128xf32>
    %57 = math.tanh %54 : vector<32x128xf32>
    %58 = arith.addf %56, %57 : vector<32x128xf32>
    %c5_i32 = arith.constant 5 : i32
    %59 = arith.index_cast %c5_i32 : i32 to index
    %c0_31 = arith.constant 0 : index
    %c0_32 = arith.constant 0 : index
    %60 = vector.load %arg2[%59, %c0_31, %c0_32] : memref<8x16x128xf32, #tpu.memory_space<vmem>>, vector<1x16x128xf32>
    %61 = vector.shape_cast %60 : vector<1x16x128xf32> to vector<16x128xf32>
    %cst_33 = arith.constant dense<0.000000e+00> : vector<32x128xf32>
    %62 = tpu.matmul %0, %58, %cst_33 {dimension_numbers = #tpu.dot_dimension_numbers<[1], [0], [0], [1], [0, 0, 1, 1], [], []>} : vector<32x32xf32>, vector<32x128xf32>, vector<32x128xf32> -> vector<32x128xf32>
    %cst_34 = arith.constant dense<0.000000e+00> : vector<32x128xf32>
    %63 = tpu.matmul %1, %61, %cst_34 {dimension_numbers = #tpu.dot_dimension_numbers<[1], [0], [0], [1], [0, 0, 1, 1], [], []>} : vector<32x16xf32>, vector<16x128xf32>, vector<32x128xf32> -> vector<32x128xf32>
    %64 = arith.addf %62, %63 : vector<32x128xf32>
    %65 = arith.addf %64, %2 : vector<32x128xf32>
    %cst_35 = arith.constant 0.899999976 : f32
    %66 = vector.broadcast %cst_35 : f32 to vector<32x128xf32>
    %67 = arith.mulf %66, %58 : vector<32x128xf32>
    %68 = math.tanh %65 : vector<32x128xf32>
    %69 = arith.addf %67, %68 : vector<32x128xf32>
    %c6_i32 = arith.constant 6 : i32
    %70 = arith.index_cast %c6_i32 : i32 to index
    %c0_36 = arith.constant 0 : index
    %c0_37 = arith.constant 0 : index
    %71 = vector.load %arg2[%70, %c0_36, %c0_37] : memref<8x16x128xf32, #tpu.memory_space<vmem>>, vector<1x16x128xf32>
    %72 = vector.shape_cast %71 : vector<1x16x128xf32> to vector<16x128xf32>
    %cst_38 = arith.constant dense<0.000000e+00> : vector<32x128xf32>
    %73 = tpu.matmul %0, %69, %cst_38 {dimension_numbers = #tpu.dot_dimension_numbers<[1], [0], [0], [1], [0, 0, 1, 1], [], []>} : vector<32x32xf32>, vector<32x128xf32>, vector<32x128xf32> -> vector<32x128xf32>
    %cst_39 = arith.constant dense<0.000000e+00> : vector<32x128xf32>
    %74 = tpu.matmul %1, %72, %cst_39 {dimension_numbers = #tpu.dot_dimension_numbers<[1], [0], [0], [1], [0, 0, 1, 1], [], []>} : vector<32x16xf32>, vector<16x128xf32>, vector<32x128xf32> -> vector<32x128xf32>
    %75 = arith.addf %73, %74 : vector<32x128xf32>
    %76 = arith.addf %75, %2 : vector<32x128xf32>
    %cst_40 = arith.constant 0.899999976 : f32
    %77 = vector.broadcast %cst_40 : f32 to vector<32x128xf32>
    %78 = arith.mulf %77, %69 : vector<32x128xf32>
    %79 = math.tanh %76 : vector<32x128xf32>
    %80 = arith.addf %78, %79 : vector<32x128xf32>
    %c7_i32 = arith.constant 7 : i32
    %81 = arith.index_cast %c7_i32 : i32 to index
    %c0_41 = arith.constant 0 : index
    %c0_42 = arith.constant 0 : index
    %82 = vector.load %arg2[%81, %c0_41, %c0_42] : memref<8x16x128xf32, #tpu.memory_space<vmem>>, vector<1x16x128xf32>
    %83 = vector.shape_cast %82 : vector<1x16x128xf32> to vector<16x128xf32>
    %cst_43 = arith.constant dense<0.000000e+00> : vector<32x128xf32>
    %84 = tpu.matmul %0, %80, %cst_43 {dimension_numbers = #tpu.dot_dimension_numbers<[1], [0], [0], [1], [0, 0, 1, 1], [], []>} : vector<32x32xf32>, vector<32x128xf32>, vector<32x128xf32> -> vector<32x128xf32>
    %cst_44 = arith.constant dense<0.000000e+00> : vector<32x128xf32>
    %85 = tpu.matmul %1, %83, %cst_44 {dimension_numbers = #tpu.dot_dimension_numbers<[1], [0], [0], [1], [0, 0, 1, 1], [], []>} : vector<32x16xf32>, vector<16x128xf32>, vector<32x128xf32> -> vector<32x128xf32>
    %86 = arith.addf %84, %85 : vector<32x128xf32>
    %87 = arith.addf %86, %2 : vector<32x128xf32>
    %cst_45 = arith.constant 0.899999976 : f32
    %88 = vector.broadcast %cst_45 : f32 to vector<32x128xf32>
    %89 = arith.mulf %88, %80 : vector<32x128xf32>
    %90 = math.tanh %87 : vector<32x128xf32>
    %91 = arith.addf %89, %90 : vector<32x128xf32>
    %c8_i32 = arith.constant 8 : i32
    %c0_46 = arith.constant 0 : index
    %c0_47 = arith.constant 0 : index
    %92 = vector.load %arg6[%c0_46, %c0_47] : memref<32x128xf32, #tpu.memory_space<vmem>>, vector<32x128xf32>
    tpu.vector_store %arg6[%c0_46, %c0_47], %91 {strides = array<i32>} : memref<32x128xf32, #tpu.memory_space<vmem>>, vector<32x128xf32>,
    return
  }
  func.func @transform_0(%arg0: i32) -> (i32, i32) {
    %c0_i32 = arith.constant 0 : i32
    %c0_i32_0 = arith.constant 0 : i32
    return %c0_i32, %arg0 : i32, i32
  }
  func.func @transform_1(%arg0: i32) -> (i32, i32, i32) {
    %c0_i32 = arith.constant 0 : i32
    %c0_i32_0 = arith.constant 0 : i32
    %c0_i32_1 = arith.constant 0 : i32
    return %c0_i32, %c0_i32_0, %arg0 : i32, i32, i32
  }
  func.func @transform_2(%arg0: i32) -> (i32, i32) {
    %c0_i32 = arith.constant 0 : i32
    %c0_i32_0 = arith.constant 0 : i32
    %c0_i32_1 = arith.constant 0 : i32
    return %c0_i32, %c0_i32_0 : i32, i32
  }
  func.func @transform_3(%arg0: i32) -> (i32, i32) {
    %c0_i32 = arith.constant 0 : i32
    %c0_i32_0 = arith.constant 0 : i32
    %c0_i32_1 = arith.constant 0 : i32
    return %c0_i32, %c0_i32_0 : i32, i32
  }
  func.func @transform_4(%arg0: i32) -> (i32, i32) {
    %c0_i32 = arith.constant 0 : i32
    %c0_i32_0 = arith.constant 0 : i32
    %c0_i32_1 = arith.constant 0 : i32
    return %c0_i32, %c0_i32_0 : i32, i32
  }
  func.func @transform_5(%arg0: i32) -> (i32, i32) {
    %c0_i32 = arith.constant 0 : i32
    %c0_i32_0 = arith.constant 0 : i32
    return %c0_i32, %arg0 : i32, i32
  }
}

</mosaic_0001>

<bundles_post_ra>
// kernel: tpu_custom_call.1
= control target key start
LH: loop header
LB: loop body
LE: loop exit
PB: predicated region body
PF: predicated region fallthrough
CT: control target
= control target key end

     0   :  { %s3180_s0 = inlined_call_operand.hbm [shape: f32[32,256], index: 0, kind: input, shape index: {}]   ;;  %s3181_s1 = inlined_call_operand.hbm [shape: f32[8,16,256], index: 1, kind: input, shape index: {}]   ;;  %s3182_s2 = inlined_call_operand.vmem [shape: f32[32,32], index: 2, kind: input, shape index: {}]   ;;  %s3183_s3 = inlined_call_operand.vmem [shape: f32[32,16], index: 3, kind: input, shape index: {}]   ;;  %s3184_s4 = inlined_call_operand.hbm [shape: f32[32,128], index: 4, kind: input, shape index: {}]   ;;  %s3185_s5 = inlined_call_operand.hbm [shape: f32[32,256], index: 5, kind: output, shape index: {}]  }
   0x1   :  { %3197 = sst [smem:[#allocation17_spill]] %s3180_s0 }
   0x2   :  { %3198 = sst [smem:[#allocation18_spill]] %s3184_s4 }
   0x3   :  { %10 = vsyncpa [#allocation3], 0 }
   0x4   :  { %12 = vsyncpa [#allocation3 + $0x1], 0 }
   0x5   :  { %13 = vsyncpa [#allocation6], 0 }
   0x6   :  { %15 = vsyncpa [#allocation6 + $0x1], 0 }
   0x7   :  { %16 = vsyncpa [#allocation4], 0 }
   0x8   :  { %18 = vsyncpa [#allocation4 + $0x1], 0  ;;  %s2697_s18 = smov 0   ;;  %s2699_s19 = smov 0  }
   0x9   :  { %s2701_s20 = smov 0   ;;  %s2703_s21 = smov 0  }
   0xa LB: > { %3199 = sst [smem:[#allocation13_spill]] %s2651_s20  ;;  %s2718_s22 = sadd.s32 4294967295, %s2655_s21   ;;  %s2655_s21 = sphi %s2703_s21, %s3220_s21   ;;  %s2651_s20 = sphi %s2701_s20, %s3222_s20   ;;  %s2647_s19 = sphi %s2699_s19, %s3224_s19   ;;  %s2643_s18 = sphi %s2697_s18, %s3223_s18  }
   0xb   : > { %s1970_s23 = sadd.s32 4294967294, %s2655_s21   ;;  %s2722_s24 = sadd.s32 1, %s2655_s21  }
   0xc   : > { %3200 = sst [smem:[#allocation14_spill]] %s2722_s24  ;;  %s31_s25 = sadd.s32 1, %s2651_s20 }
   0xd   : > { %s28_s26 = ssub.s32 %s2655_s21, %s2722_s24  ;;  %p38_p0 = scmp.ne.s32.totalorder %s2651_s20, %s2647_s19 }
   0xe   : > { %p29_p1 = scmp.eq.s32.totalorder %s28_s26, 0  ;;  %p39_p2 = scmp.eq.s32.totalorder %s2655_s21, 0 }
   0xf   : > { %p44_p3 = scmp.ne.s32.totalorder %s2647_s19, %s2643_s18  ;;  %p45_p4 = scmp.eq.s32.totalorder %s2718_s22, 0 }
  0x10   : > { %s2734_s27 = scalar_select %p29_p1, %s2651_s20, %s31_s25  }
  0x11   : > { %p2736_p5 = por %p39_p2, %p38_p0  ;;  %p2742_p6 = por %p45_p4, %p44_p3 }
  0x12   : > { %3201 = sst [smem:[#allocation15_spill]] %s2734_s27  ;;  %p157_p7 = scmp.eq.s32.totalorder %s2718_s22, 1 }
  0x13   : > { %s3203_s29 = scalar_select %p2742_p6, 1, 0 }
  0x14   : > { %p163_p8 = scmp.eq.s32.totalorder %s1970_s23, 1  ;;  %p1971_p9 = scmp.ge.s32.totalorder %s2655_s21, 1 }
  0x15   : > { %p170_p10 = scmp.lt.s32.totalorder %s2655_s21, 3  ;;  %p2749_p11 = por %p157_p7, %p38_p0 }
  0x16   : > { %p2753_p12 = por %p163_p8, %p44_p3  ;;  %s2657_s8 = smov [#allocation7]  }
  0x17   : > { %s3204_s30 = scalar_select %p2749_p11, 1, 0 }
  0x18   : > { %s3205_s6 = scalar_select %p2753_p12, 1, 0 }
  0x19   : > { %p2757_p13 = pnand %p1971_p9, %p170_p10  ;;  %s188_s9 = sshll.u32 %s2657_s8, 4  ;;  %s189_s9 = int_to_ptr.vmem [resolvable:$true] %s188_s9 }
  0x1a   : > { %3206 = sst [smem:[#allocation16_spill]] %s3205_s6  ;;  %p2395_p3 = scmp.lt.s32.totalorder %s2655_s21, 2 }
  0x1b   : > { %s3207_s7 = scalar_select %p2757_p13, 1, 0 }
  0x1c   : > { %p2379_p1 = pneg %p2757_p13  ;;  %s2772_s11 = sand.u32 1, %s2651_s20  }
  0x1d   : > { %s2512_s12 = scalar_lea.vmem %s189_s9, 512  ;;  %p2520_p12 = scmp.lt.s32.totalorder %s189_s9, %s189_s9 }
  0x1e   : > { %p2765_p2 = pnand %p2379_p1, %p45_p4  ;;  %p2513_p8 = scmp.ne.s32.totalorder %s189_s9, %s2512_s12 }
  0x1f   : > { %p2521_p11 = scmp.lt.s32.totalorder %s2512_s12, %s2512_s12 }
  0x20   : > { %p2503_p7 = pneg %p2765_p2 }
  0x21   : > { %p2522_p6 = por %p2521_p11, %p2520_p12 }
  0x22   : > { %p2515_p9 = pnand %p2513_p8, %p2503_p7 }
  0x24   : > { %p2516_p10 = pneg %p2515_p9 }
  0x26   : > { %p2523_p13 = pnand %p2522_p6, %p2516_p10 }
  0x28   : > { %2526 = shalt.err (!%p2523_p13)
}
  0x29   : > { %s3189_s13 = smov 128   ;;  %s3191_s14 = smov 8  }
  0x2a   : > { %s3209_s4 = sld [smem:[#allocation18_spill]]  ;;  %p2788_p6 = pnand %p2395_p3, %p2736_p5 }
  0x2b   : > { %s1974_s23 = sshll.u32 %s2772_s11, 5  ;;  %s1975_s25 = sshll.u32 %s2655_s21, 7 }
  0x2c   : > { %s3211_s0 = sld [smem:[#allocation17_spill]]  ;;  %s206_s12 = scalar_lea.vmem [#allocation2], %s1974_s23 }
  0x2d   : > { %s2804_s16 = scalar_lea.hbm %s3181_s1, %s1975_s25  ;;  %p2529_p11 = pneg %p2788_p6 }
  0x30   : > { %2382 = dma.hbm_to_vmem [thread:$0]  (!%p2765_p2), %s3209_s4, 512, %s189_s9, [#allocation6], %s3189_s13, %s3189_s13, %s3191_s14  }
  0x31   : > { %s212_s9 = sshll.u32 %s206_s12, 4  ;;  %s203_s13 = scalar_lea.sflag [#allocation3], %s2772_s11  ;;  %s2799_s9 = int_to_ptr.vmem [resolvable:$true] %s212_s9 }
  0x32   : > { %s2797_s10 = scalar_lea.hbm %s3211_s0, %s1975_s25  ;;  %s2532_s23 = scalar_lea.hbm %s3211_s0, 1024 }
  0x33   : > { %s2527_s14 = scalar_lea.hbm %s2797_s10, 512  ;;  %p2533_p1 = scmp.lt.s32.totalorder %s2797_s10, %s3211_s0 }
  0x34   : > { %p2528_p5 = scmp.ne.s32.totalorder %s2797_s10, %s2527_s14  ;;  %p2534_p2 = scmp.lt.s32.totalorder %s2532_s23, %s2527_s14 }
  0x36   : > { %p2530_p12 = pnand %p2529_p11, %p2528_p5  ;;  %p2535_p3 = por %p2534_p2, %p2533_p1 }
  0x38   : > { %p2531_p13 = pneg %p2530_p12 }
  0x3a   : > { %p2536_p7 = pnand %p2535_p3, %p2531_p13 }
  0x3c   : > { %2539 = shalt.err (!%p2536_p7)
}
  0x3d   : > { %s2540_s25 = scalar_lea.vmem %s2799_s9, 512  ;;  %s2660_s28 = smov [#allocation2]  }
  0x3e   : > { %p2541_p8 = scmp.ne.s32.totalorder %s2799_s9, %s2540_s25  ;;  %s2545_s15 = sshll.u32 %s2660_s28, 4  ;;  %s2546_s15 = int_to_ptr.vmem [resolvable:$false] %s2545_s15 }
  0x3f   : > { %s2547_s26 = scalar_lea.vmem %s2546_s15, 1024  ;;  %p2548_p5 = scmp.lt.s32.totalorder %s2799_s9, %s2546_s15 }
  0x40   : > { %p2543_p9 = pnand %p2541_p8, %p2529_p11  ;;  %p2549_p12 = scmp.lt.s32.totalorder %s2547_s26, %s2540_s25 }
  0x42   : > { %p2544_p10 = pneg %p2543_p9  ;;  %p2550_p0 = por %p2549_p12, %p2548_p5 }
  0x44   : > { %p2551_p1 = pnand %p2550_p0, %p2544_p10 }
  0x46   : > { %2554 = shalt.err (!%p2551_p1)
}
  0x47   : > { %s2661_s4 = smov 256   ;;  %s3212_s14 = smov 8  }
  0x48   : > { %s3213_s8 = smov 128   ;;  %s222_s23 = sand.u32 1, %s2655_s21  }
  0x49   : > { %2386 = dma.hbm_to_vmem [thread:$0]  (!%p2788_p6), %s2797_s10, 512, %s2799_s9, %s203_s13, %s2661_s4, %s3213_s8, %s3212_s14  }
  0x4a   : > { %s1976_s12 = sshll.u32 %s2772_s11, 7  ;;  %s223_s15 = scalar_lea.sflag [#allocation6], %s222_s23 }
  0x4b   : > { %s226_s25 = scalar_lea.vmem [#allocation5], %s1976_s12  ;;  %s2555_s26 = scalar_lea.hbm %s2804_s16, 2048 }
  0x4c   : > { %s232_s28 = sshll.u32 %s226_s25, 4  ;;  %p2556_p0 = scmp.ne.s32.totalorder %s2804_s16, %s2555_s26  ;;  %s2838_s28 = int_to_ptr.vmem [resolvable:$true] %s232_s28 }
  0x4d   : > { %s2560_s20 = scalar_lea.hbm %s3181_s1, 4096  ;;  %p2561_p3 = scmp.lt.s32.totalorder %s2804_s16, %s3181_s1 }
  0x4e   : > { %p2558_p13 = pnand %p2556_p0, %p2529_p11  ;;  %p2562_p7 = scmp.lt.s32.totalorder %s2560_s20, %s2555_s26 }
  0x50   : > { %p2559_p2 = pneg %p2558_p13  ;;  %p2563_p8 = por %p2562_p7, %p2561_p3 }
  0x52   : > { %p2564_p9 = pnand %p2563_p8, %p2559_p2 }
  0x54   : > { %2567 = shalt.err (!%p2564_p9)
}
  0x55   : > { %s2568_s11 = scalar_lea.vmem %s2838_s28, 2048  ;;  %s2662_s0 = smov [#allocation5]  }
  0x56   : > { %p2569_p10 = scmp.ne.s32.totalorder %s2838_s28, %s2568_s11  ;;  %s2573_s27 = sshll.u32 %s2662_s0, 4  ;;  %s2574_s27 = int_to_ptr.vmem [resolvable:$false] %s2573_s27 }
  0x57   : > { %s2575_s13 = scalar_lea.vmem %s2574_s27, 4096  ;;  %p2576_p1 = scmp.lt.s32.totalorder %s2838_s28, %s2574_s27 }
  0x58   : > { %p2571_p5 = pnand %p2569_p10, %p2529_p11  ;;  %p2577_p0 = scmp.lt.s32.totalorder %s2575_s13, %s2568_s11 }
  0x5a   : > { %p2572_p12 = pneg %p2571_p5  ;;  %p2578_p13 = por %p2577_p0, %p2576_p1 }
  0x5c   : > { %p2579_p3 = pnand %p2578_p13, %p2572_p12 }
  0x5e   : > { %2582 = shalt.err (!%p2579_p3)
}
  0x5f   : > { %2389 = dma.hbm_to_vmem [thread:$0]  (!%p2788_p6), %s2804_s16, 2048, %s2838_s28, %s223_s15, %s2661_s4, %s3213_s8, %s3212_s14  }
  0x60   : > { %p3214_p11 = scmp.ne.s32.totalorder %s3207_s7, 0 }
  0x61   : > { %s2868_s20 = sand.u32 (!%p3214_p11), 1, %s2647_s19   ;;  %p3215_p2 = scmp.ne.s32.totalorder (!%p3214_p11), %s3203_s29, 0 }
  0x62   : > { %244 = sbr.rel (%p3214_p11) target bundleno = 1927 (0x787), region = 40  ;;  %s1979_s24 = sshll.u32 (!%p3214_p11), %s2868_s20, 5 }
  0x63   : > { %s247_s6 = scalar_lea.sflag (!%p3214_p11), [#allocation3], %s2868_s20  ;;  %s250_s17 = scalar_lea.vmem (!%p3214_p11), [#allocation2], %s1979_s24 }
  0x67   : > { %2626 = dma.done.wait (%p3215_p2), %s247_s6, 512  }
  0x68   : > { %2628 = vsyncadd (%p3215_p2), %s247_s6, 4294966784  ;;  %s255_s7 = sand.u32 1, %s2718_s22   ;;  %s1980_s10 = sshll.u32 %s2868_s20, 7 }
  0x69   : > { %s256_s9 = scalar_lea.sflag [#allocation6], %s255_s7  ;;  %s2880_s16 = scalar_lea.vmem [#allocation5], %s1980_s10 }
  0x6a   : > { %2630 = dma.done.wait (%p3215_p2), %s256_s9, 2048  }
  0x6b   : > { %2632 = vsyncadd (%p3215_p2), %s256_s9, 4294965248 }
  0x6c   : > { %2634 = dma.done.wait (%p45_p4), [#allocation6], 512  }
  0x6d   : > { %2636 = vsyncadd (%p45_p4), [#allocation6], 4294966784  ;;  %v2890_v0 = vld [vmem:[%s250_s17 + $0x18] sm:$0xff]  ;;  %v312_v1 = vld [vmem:[%s2880_s16 + $0x8] sm:$0xff]  ;;  %vm313_vm0 = vcmask 130048   ;;  %vm411_vm1 = vcmask 261120  }
  0x6e   : > { %v2893_v2 = vld [vmem:[%s250_s17 + $0x10] sm:$0xff]  ;;  %2187 = vmatprep.subr.mxu1 %v2890_v0  ;;  %2177 = vmatprep.subr.mxu0 %v312_v1  ;;  %v311_v3 = vld [vmem:[%s2880_s16] sm:$0xff]  ;;  %v2898_v4 = vld [vmem:[%s250_s17 + $0x8] sm:$0xff]  ;;  %v516_v36 = vmul.f32 0.9, %v2890_v0  ;;  %s2062_s7 = sshll.u32 %s2718_s22, 7 }
  0x6f   : > { %2188 = vmatpush3.msra.mxu1 %v2890_v0  ;;  %2178 = vmatpush3.msra.mxu0 %v312_v1  ;;  %v2903_v5 = vld [vmem:[%s3183_s3] sm:$0xff]  ;;  %v2909_v6 = vld [vmem:[%s3183_s3 + $0x8] sm:$0xff]  ;;  %v2923_v9 = vld [vmem:[%s3183_s3 + $0x10] sm:$0xff]  ;;  %v515_v37 = vmul.f32 0.9, %v2893_v2  ;;  %s294_s10 = scalar_lea.vmem [#allocation8], %s1979_s24  ;;  %s3135_s4 = scalar_lea.hbm %s3185_s5, %s2062_s7 }
  0x70   : > { %2189 = vmatprep.subr.mxu1 %v2893_v2  ;;  %2179 = vmatprep.subr.mxu0 %v311_v3  ;;  %v307_v7 = vld [vmem:[%s250_s17] sm:$0xff]  ;;  %v2931_v10 = vld [vmem:[%s3182_s2 + $0x8] sm:$0xff]  ;;  %v2938_v11 = vld [vmem:[%s3183_s3 + $0x18] sm:$0xff]  ;;  %v514_v40 = vmul.f32 0.9, %v2898_v4  ;;  %s1865_s9 = sshll.u32 %s294_s10, 4  ;;  %s3137_s9 = int_to_ptr.vmem [resolvable:$true] %s1865_s9 }
  0x71   : > { %2190 = vmatpush3.msra.mxu1 %v2893_v2  ;;  %2180 = vmatpush3.msra.mxu0 %v311_v3  ;;  %v2915_v8 = vld [vmem:[%s3182_s2] sm:$0xff]  ;;  %v2943_v12 = vld [vmem:[%s3182_s2 + $0x10] sm:$0xff]  ;;  %v2956_v13 = vld [vmem:[%s3182_s2 + $0x18] sm:$0xff]  ;;  %v513_v43 = vmul.f32 0.9, %v307_v7  ;;  %s1853_s22 = scalar_lea.sflag [#allocation4], %s2868_s20 }
  0x72   : > { %2191 = vmatprep.subr.mxu1 %v2898_v4  ;;  %2181 = vmatprep.mubr.msk.f32.mxu0 %vm313_vm0, %v2903_v5  ;;  %v1992_v14 = vld [vmem:[%s2880_s16 + $0x18] sm:$0xff]  ;;  %v1991_v15 = vld [vmem:[%s2880_s16 + $0x10] sm:$0xff]  ;;  %v2974_v22 = vld [vmem:[#allocation7 + $0x8] sm:$0xff]  ;;  %s2583_s24 = scalar_lea.vmem %s3137_s9, 512  ;;  %p3216_p6 = scmp.ne.s32.totalorder %s3204_s30, 0 }
  0x73   : > { %2192 = vmatpush3.msra.mxu1 %v2898_v4  ;;  %2182 = vmatmul.mubr.msk.f32.vlgmr.msra.gmra.mxu0 %vm313_vm0, %v2909_v6  ;;  %v2976_v23 = vld [vmem:[#allocation7 + $0x18] sm:$0xff]  ;;  %v2979_v28 = vld [vmem:[#allocation7] sm:$0xff]  ;;  %v2981_v30 = vld [vmem:[#allocation7 + $0x10] sm:$0xff]  ;;  %p2584_p4 = scmp.ne.s32.totalorder %s3137_s9, %s2583_s24  ;;  %s2663_s14 = smov [#allocation8]  }
  0x74   : > { %2193 = vmatprep.subr.mxu1 %v307_v7  ;;  %2195 = vmatprep.mubr.msk.f32.mxu1 %vm411_vm1, %v2915_v8  ;;  %v2002_v48 = vld [vmem:[%s2880_s16 + $0x28] sm:$0xff]  ;;  %v2001_v49 = vld [vmem:[%s2880_s16 + $0x20] sm:$0xff]  ;;  %s2587_s8 = sshll.u32 %s2663_s14, 4  ;;  %s2588_s8 = int_to_ptr.vmem [resolvable:$false] %s2587_s8 }
  0x75   : > { %2194 = vmatpush3.msra.mxu1 %v307_v7  ;;  %2184 = vmatprep.mubr.msk.f32.mxu0 %vm313_vm0, %v2923_v9  ;;  %p2585_p7 = pnand %p2584_p4, %p3216_p6  ;;  %s2589_s23 = scalar_lea.vmem %s2588_s8, 1024 }
  0x76   : > { %2196 = vmatmul.mubr.msk.f32.vlgmr.msra.gmra.mxu1 %vm411_vm1, %v2931_v10  ;;  %2201 = vmatprep.subr.mxu0 %v1992_v14  ;;  %p2590_p9 = scmp.lt.s32.totalorder %s3137_s9, %s2588_s8  ;;  %p2591_p10 = scmp.lt.s32.totalorder %s2589_s23, %s2583_s24 }
  0x77   : > { %2185 = vmatmul.mubr.msk.f32.gmra.mxu0 %vm313_vm0, %v2938_v11  ;;  %2198 = vmatprep.mubr.msk.f32.mxu1 %vm411_vm1, %v2943_v12  ;;  %p2586_p8 = pneg %p2585_p7 }
  0x78   : > { %2205 = vmatprep.mubr.msk.f32.mxu0 %vm313_vm0, %v2903_v5  ;;  %2202 = vmatpush3.msra.mxu0 %v1992_v14  ;;  %p2592_p5 = por %p2591_p10, %p2590_p9 }
  0x79   : > { %2203 = vmatprep.subr.mxu0 %v1991_v15 }
  0x7a   : > { %2199 = vmatmul.mubr.msk.f32.gmra.mxu1 %vm411_vm1, %v2956_v13  ;;  %2204 = vmatpush3.msra.mxu0 %v1991_v15  ;;  %p2593_p12 = pnand %p2592_p5, %p2586_p8 }
  0x7b   : > { %2219 = vmatprep.mubr.msk.f32.mxu1 %vm411_vm1, %v2915_v8  ;;  %2206 = vmatmul.mubr.msk.f32.vlgmr.msra.gmra.mxu0 %vm313_vm0, %v2909_v6 }
  0x7c   : > { %2208 = vmatprep.mubr.msk.f32.mxu0 %vm313_vm0, %v2923_v9  ;;  %2225 = vmatprep.subr.mxu0 %v2002_v48 }
  0x7d   : > { %2226 = vmatpush3.msra.mxu0 %v2002_v48 }
  0x7e   : > { %2227 = vmatprep.subr.mxu0 %v2001_v49 }
  0x7f   : > { %2209 = vmatmul.mubr.msk.f32.gmra.mxu0 %vm313_vm0, %v2938_v11 }
  0x80   : > { %2229 = vmatprep.mubr.msk.f32.mxu0 %vm313_vm0, %v2903_v5  ;;  %2228 = vmatpush3.msra.mxu0 %v2001_v49 }
  0x83   : > { %2230 = vmatmul.mubr.msk.f32.vlgmr.msra.gmra.mxu0 %vm313_vm0, %v2909_v6 }
  0x84   : > { %2232 = vmatprep.mubr.msk.f32.mxu0 %vm313_vm0, %v2923_v9 }
  0x87   : > { %2233 = vmatmul.mubr.msk.f32.gmra.mxu0 %vm313_vm0, %v2938_v11 }
  0x88   : > { %2253 = vmatprep.mubr.msk.f32.mxu0 %vm313_vm0, %v2903_v5 }
 0x133   : > { %v2183_v16 = vpop.f32.mrf.mxu0 }
 0x135   : > { %v392_v17 = vpop.f32.mrf.mxu0 }
 0x136   : > { %v2197_v18 = vpop.f32.mrf.mxu1 }
 0x137   : > { %v496_v19 = vadd.f32 %v2197_v18, %v2183_v16  ;;  %v2186_v20 = vpop.f32.mrf.mxu0 }
 0x138   : > { %v490_v21 = vpop.f32.mrf.mxu1 }
 0x139   : > { %v491_v25 = vadd.f32 %v490_v21, %v392_v17  ;;  %v510_v27 = vadd.f32 %v496_v19, %v2974_v22  ;;  %v402_v29 = vpop.f32.mrf.mxu0 }
 0x13a   : > { %v2200_v24 = vpop.f32.mrf.mxu1 }
 0x13b   : > { %v506_v26 = vadd.f32 %v2200_v24, %v2186_v20  ;;  %v509_v34 = vadd.f32 %v491_v25, %v2979_v28  ;;  %v2207_v50 = vpop.f32.mrf.mxu0  ;;  %v2012_v24 = vld [vmem:[%s2880_s16 + $0x38] sm:$0xff]  ;;  %v2011_v25 = vld [vmem:[%s2880_s16 + $0x30] sm:$0xff] }
 0x13c   : > { %v500_v31 = vpop.f32.mrf.mxu1  ;;  %2249 = vmatprep.subr.mxu0 %v2012_v24 }
 0x13d   : > { %v512_v32 = vadd.f32 %v506_v26, %v2976_v23  ;;  %v501_v33 = vadd.f32 %v500_v31, %v402_v29  ;;  %v594_v51 = vpop.f32.mrf.mxu0  ;;  %2250 = vmatpush3.msra.mxu0 %v2012_v24 }
 0x13e   : > { %2251 = vmatprep.subr.mxu0 %v2011_v25 }
 0x13f   : > { %2437 = vtanh.f32 %v512_v32  ;;  %v511_v35 = vadd.f32 %v501_v33, %v2981_v30  ;;  %v2210_v54 = vpop.f32.mrf.mxu0  ;;  %2252 = vmatpush3.msra.mxu0 %v2011_v25 }
 0x140   : > { %2439 = vtanh.f32 %v510_v27  ;;  %2254 = vmatmul.mubr.msk.f32.vlgmr.msra.gmra.mxu0 %vm313_vm0, %v2909_v6 }
 0x141   : > { %2441 = vtanh.f32 %v511_v35  ;;  %v604_v60 = vpop.f32.mrf.mxu0  ;;  %2256 = vmatprep.mubr.msk.f32.mxu0 %vm313_vm0, %v2923_v9 }
 0x142   : > { %2443 = vtanh.f32 %v509_v34 }
 0x143   : > { %v2231_v26 = vpop.f32.mrf.mxu0 }
 0x144   : > { %2257 = vmatmul.mubr.msk.f32.gmra.mxu0 %vm313_vm0, %v2938_v11 }
 0x145   : > { %2277 = vmatprep.mubr.msk.f32.mxu0 %vm313_vm0, %v2903_v5  ;;  %v783_v27 = vpop.f32.mrf.mxu0 }
 0x147   : > { %v2234_v32 = vpop.f32.mrf.mxu0 }
 0x14c   : > { %v2438_v38 = vpop.eup %2437 }
 0x14d   : > { %v2440_v39 = vpop.eup %2439  ;;  %v524_v41 = vadd.f32 %v2438_v38, %v516_v36  ;;  %v793_v38 = vpop.f32.mrf.mxu0 }
 0x14e   : > { %v2442_v42 = vpop.eup %2441  ;;  %v522_v46 = vadd.f32 %v2440_v39, %v514_v40 }
 0x14f   : > { %2211 = vmatprep.subr.mxu1 %v524_v41  ;;  %v523_v44 = vadd.f32 %v2442_v42, %v515_v37  ;;  %v2444_v45 = vpop.eup %2443  ;;  %v705_v2 = vmul.f32 0.9, %v524_v41 }
 0x150   : > { %2212 = vmatpush3.msra.mxu1 %v524_v41  ;;  %v521_v47 = vadd.f32 %v2444_v45, %v513_v43  ;;  %v703_v17 = vmul.f32 0.9, %v522_v46 }
 0x151   : > { %2213 = vmatprep.subr.mxu1 %v523_v44  ;;  %v704_v14 = vmul.f32 0.9, %v523_v44 }
 0x152   : > { %2214 = vmatpush3.msra.mxu1 %v523_v44  ;;  %v702_v20 = vmul.f32 0.9, %v521_v47 }
 0x153   : > { %2215 = vmatprep.subr.mxu1 %v522_v46 }
 0x154   : > { %2216 = vmatpush3.msra.mxu1 %v522_v46 }
 0x155   : > { %2217 = vmatprep.subr.mxu1 %v521_v47 }
 0x156   : > { %2218 = vmatpush3.msra.mxu1 %v521_v47 }
 0x157   : > { %2220 = vmatmul.mubr.msk.f32.vlgmr.msra.gmra.mxu1 %vm411_vm1, %v2931_v10 }
 0x158   : > { %2222 = vmatprep.mubr.msk.f32.mxu1 %vm411_vm1, %v2943_v12 }
 0x15b   : > { %2223 = vmatmul.mubr.msk.f32.gmra.mxu1 %vm411_vm1, %v2956_v13 }
 0x15c   : > { %2243 = vmatprep.mubr.msk.f32.mxu1 %vm411_vm1, %v2915_v8 }
 0x217   : > { %v2221_v52 = vpop.f32.mrf.mxu1 }
 0x218   : > { %v685_v53 = vadd.f32 %v2221_v52, %v2207_v50 }
 0x219   : > { %v679_v55 = vpop.f32.mrf.mxu1 }
 0x21a   : > { %v680_v57 = vadd.f32 %v679_v55, %v594_v51  ;;  %v699_v59 = vadd.f32 %v685_v53, %v2974_v22 }
 0x21b   : > { %v2224_v56 = vpop.f32.mrf.mxu1 }
 0x21c   : > { %v695_v58 = vadd.f32 %v2224_v56, %v2210_v54  ;;  %v698_v0 = vadd.f32 %v680_v57, %v2979_v28  ;;  %v2022_v56 = vld [vmem:[%s2880_s16 + $0x48] sm:$0xff]  ;;  %v2021_v57 = vld [vmem:[%s2880_s16 + $0x40] sm:$0xff] }
 0x21d   : > { %v689_v61 = vpop.f32.mrf.mxu1  ;;  %2273 = vmatprep.subr.mxu0 %v2022_v56 }
 0x21e   : > { %v701_v62 = vadd.f32 %v695_v58, %v2976_v23  ;;  %v690_v63 = vadd.f32 %v689_v61, %v604_v60  ;;  %2274 = vmatpush3.msra.mxu0 %v2022_v56  ;;  %v2255_v58 = vpop.f32.mrf.mxu0 }
 0x21f   : > { %2275 = vmatprep.subr.mxu0 %v2021_v57 }
 0x220   : > { %2445 = vtanh.f32 %v701_v62  ;;  %v700_v1 = vadd.f32 %v690_v63, %v2981_v30  ;;  %2276 = vmatpush3.msra.mxu0 %v2021_v57 }
 0x221   : > { %2447 = vtanh.f32 %v699_v59  ;;  %2278 = vmatmul.mubr.msk.f32.vlgmr.msra.gmra.mxu0 %vm313_vm0, %v2909_v6  ;;  %v972_v59 = vpop.f32.mrf.mxu0 }
 0x222   : > { %2449 = vtanh.f32 %v700_v1  ;;  %2280 = vmatprep.mubr.msk.f32.mxu0 %vm313_vm0, %v2923_v9 }
 0x223   : > { %2451 = vtanh.f32 %v698_v0  ;;  %v2258_v62 = vpop.f32.mrf.mxu0 }
 0x225   : > { %2281 = vmatmul.mubr.msk.f32.gmra.mxu0 %vm313_vm0, %v2938_v11 }
 0x226   : > { %2301 = vmatprep.mubr.msk.f32.mxu0 %vm313_vm0, %v2903_v5 }
 0x22d   : > { %v2446_v3 = vpop.eup %2445 }
 0x22e   : > { %v2448_v4 = vpop.eup %2447  ;;  %v713_v7 = vadd.f32 %v2446_v3, %v705_v2 }
 0x22f   : > { %v2450_v15 = vpop.eup %2449  ;;  %v711_v19 = vadd.f32 %v2448_v4, %v703_v17  ;;  %v982_v4 = vpop.f32.mrf.mxu0 }
 0x230   : > { %2235 = vmatprep.subr.mxu1 %v713_v7  ;;  %v712_v16 = vadd.f32 %v2450_v15, %v704_v14  ;;  %v2452_v18 = vpop.eup %2451  ;;  %v894_v44 = vmul.f32 0.9, %v713_v7 }
 0x231   : > { %2236 = vmatpush3.msra.mxu1 %v713_v7  ;;  %v710_v21 = vadd.f32 %v2452_v18, %v702_v20  ;;  %v892_v51 = vmul.f32 0.9, %v711_v19 }
 0x232   : > { %2237 = vmatprep.subr.mxu1 %v712_v16  ;;  %v893_v48 = vmul.f32 0.9, %v712_v16 }
 0x233   : > { %2238 = vmatpush3.msra.mxu1 %v712_v16  ;;  %v891_v54 = vmul.f32 0.9, %v710_v21 }
 0x234   : > { %2239 = vmatprep.subr.mxu1 %v711_v19 }
 0x235   : > { %2240 = vmatpush3.msra.mxu1 %v711_v19 }
 0x236   : > { %2241 = vmatprep.subr.mxu1 %v710_v21 }
 0x237   : > { %2242 = vmatpush3.msra.mxu1 %v710_v21 }
 0x238   : > { %2244 = vmatmul.mubr.msk.f32.vlgmr.msra.gmra.mxu1 %vm411_vm1, %v2931_v10 }
 0x239   : > { %2246 = vmatprep.mubr.msk.f32.mxu1 %vm411_vm1, %v2943_v12 }
 0x23c   : > { %2247 = vmatmul.mubr.msk.f32.gmra.mxu1 %vm411_vm1, %v2956_v13 }
 0x23d   : > { %2267 = vmatprep.mubr.msk.f32.mxu1 %vm411_vm1, %v2915_v8 }
 0x2f8   : > { %v2245_v29 = vpop.f32.mrf.mxu1 }
 0x2f9   : > { %v874_v31 = vadd.f32 %v2245_v29, %v2231_v26 }
 0x2fa   : > { %v868_v33 = vpop.f32.mrf.mxu1 }
 0x2fb   : > { %v869_v35 = vadd.f32 %v868_v33, %v783_v27  ;;  %v888_v37 = vadd.f32 %v874_v31, %v2974_v22 }
 0x2fc   : > { %v2248_v34 = vpop.f32.mrf.mxu1 }
 0x2fd   : > { %v884_v36 = vadd.f32 %v2248_v34, %v2234_v32  ;;  %v887_v42 = vadd.f32 %v869_v35, %v2979_v28  ;;  %v2032_v34 = vld [vmem:[%s2880_s16 + $0x58] sm:$0xff]  ;;  %v2031_v35 = vld [vmem:[%s2880_s16 + $0x50] sm:$0xff] }
 0x2fe   : > { %v878_v39 = vpop.f32.mrf.mxu1  ;;  %2297 = vmatprep.subr.mxu0 %v2032_v34 }
 0x2ff   : > { %v890_v40 = vadd.f32 %v884_v36, %v2976_v23  ;;  %v879_v41 = vadd.f32 %v878_v39, %v793_v38  ;;  %2298 = vmatpush3.msra.mxu0 %v2032_v34  ;;  %v2279_v36 = vpop.f32.mrf.mxu0 }
 0x300   : > { %2299 = vmatprep.subr.mxu0 %v2031_v35 }
 0x301   : > { %2453 = vtanh.f32 %v890_v40  ;;  %v889_v43 = vadd.f32 %v879_v41, %v2981_v30  ;;  %2300 = vmatpush3.msra.mxu0 %v2031_v35 }
 0x302   : > { %2455 = vtanh.f32 %v888_v37  ;;  %2302 = vmatmul.mubr.msk.f32.vlgmr.msra.gmra.mxu0 %vm313_vm0, %v2909_v6  ;;  %v1161_v37 = vpop.f32.mrf.mxu0 }
 0x303   : > { %2457 = vtanh.f32 %v889_v43  ;;  %2304 = vmatprep.mubr.msk.f32.mxu0 %vm313_vm0, %v2923_v9 }
 0x304   : > { %2459 = vtanh.f32 %v887_v42  ;;  %v2282_v40 = vpop.f32.mrf.mxu0 }
 0x306   : > { %2305 = vmatmul.mubr.msk.f32.gmra.mxu0 %vm313_vm0, %v2938_v11 }
 0x307   : > { %2325 = vmatprep.mubr.msk.f32.mxu0 %vm313_vm0, %v2903_v5 }
 0x30e   : > { %v2454_v45 = vpop.eup %2453 }
 0x30f   : > { %v2456_v46 = vpop.eup %2455  ;;  %v902_v47 = vadd.f32 %v2454_v45, %v894_v44 }
 0x310   : > { %v2458_v49 = vpop.eup %2457  ;;  %v900_v53 = vadd.f32 %v2456_v46, %v892_v51  ;;  %v1171_v46 = vpop.f32.mrf.mxu0 }
 0x311   : > { %2259 = vmatprep.subr.mxu1 %v902_v47  ;;  %v901_v50 = vadd.f32 %v2458_v49, %v893_v48  ;;  %v2460_v52 = vpop.eup %2459  ;;  %v1083_v18 = vmul.f32 0.9, %v902_v47 }
 0x312   : > { %2260 = vmatpush3.msra.mxu1 %v902_v47  ;;  %v899_v55 = vadd.f32 %v2460_v52, %v891_v54  ;;  %v1081_v27 = vmul.f32 0.9, %v900_v53 }
 0x313   : > { %2261 = vmatprep.subr.mxu1 %v901_v50  ;;  %v1082_v24 = vmul.f32 0.9, %v901_v50 }
 0x314   : > { %2262 = vmatpush3.msra.mxu1 %v901_v50  ;;  %v1080_v32 = vmul.f32 0.9, %v899_v55 }
 0x315   : > { %2263 = vmatprep.subr.mxu1 %v900_v53 }
 0x316   : > { %2264 = vmatpush3.msra.mxu1 %v900_v53 }
 0x317   : > { %2265 = vmatprep.subr.mxu1 %v899_v55 }
 0x318   : > { %2266 = vmatpush3.msra.mxu1 %v899_v55 }
 0x319   : > { %2268 = vmatmul.mubr.msk.f32.vlgmr.msra.gmra.mxu1 %vm411_vm1, %v2931_v10 }
 0x31a   : > { %2270 = vmatprep.mubr.msk.f32.mxu1 %vm411_vm1, %v2943_v12 }
 0x31d   : > { %2271 = vmatmul.mubr.msk.f32.gmra.mxu1 %vm411_vm1, %v2956_v13 }
 0x31e   : > { %2291 = vmatprep.mubr.msk.f32.mxu1 %vm411_vm1, %v2915_v8 }
 0x3d9   : > { %v2269_v60 = vpop.f32.mrf.mxu1 }
 0x3da   : > { %v1063_v61 = vadd.f32 %v2269_v60, %v2255_v58 }
 0x3db   : > { %v1057_v63 = vpop.f32.mrf.mxu1 }
 0x3dc   : > { %v1058_v1 = vadd.f32 %v1057_v63, %v972_v59  ;;  %v1077_v3 = vadd.f32 %v1063_v61, %v2974_v22 }
 0x3dd   : > { %v2272_v0 = vpop.f32.mrf.mxu1 }
 0x3de   : > { %v1073_v2 = vadd.f32 %v2272_v0, %v2258_v62  ;;  %v1076_v16 = vadd.f32 %v1058_v1, %v2979_v28  ;;  %v2042_v0 = vld [vmem:[%s2880_s16 + $0x68] sm:$0xff]  ;;  %v2041_v1 = vld [vmem:[%s2880_s16 + $0x60] sm:$0xff] }
 0x3df   : > { %v1067_v7 = vpop.f32.mrf.mxu1  ;;  %2321 = vmatprep.subr.mxu0 %v2042_v0 }
 0x3e0   : > { %v1079_v14 = vadd.f32 %v1073_v2, %v2976_v23  ;;  %v1068_v15 = vadd.f32 %v1067_v7, %v982_v4  ;;  %2322 = vmatpush3.msra.mxu0 %v2042_v0  ;;  %v2303_v2 = vpop.f32.mrf.mxu0 }
 0x3e1   : > { %2323 = vmatprep.subr.mxu0 %v2041_v1 }
 0x3e2   : > { %2461 = vtanh.f32 %v1079_v14  ;;  %v1078_v17 = vadd.f32 %v1068_v15, %v2981_v30  ;;  %2324 = vmatpush3.msra.mxu0 %v2041_v1 }
 0x3e3   : > { %2463 = vtanh.f32 %v1077_v3  ;;  %2326 = vmatmul.mubr.msk.f32.vlgmr.msra.gmra.mxu0 %vm313_vm0, %v2909_v6  ;;  %v1350_v3 = vpop.f32.mrf.mxu0 }
 0x3e4   : > { %2465 = vtanh.f32 %v1078_v17  ;;  %2328 = vmatprep.mubr.msk.f32.mxu0 %vm313_vm0, %v2923_v9 }
 0x3e5   : > { %2467 = vtanh.f32 %v1076_v16  ;;  %v2306_v14 = vpop.f32.mrf.mxu0 }
 0x3e7   : > { %2329 = vmatmul.mubr.msk.f32.gmra.mxu0 %vm313_vm0, %v2938_v11 }
 0x3e8   : > { %2349 = vmatprep.mubr.msk.f32.mxu0 %vm313_vm0, %v2903_v5 }
 0x3ef   : > { %v2462_v19 = vpop.eup %2461 }
 0x3f0   : > { %v2464_v20 = vpop.eup %2463  ;;  %v1091_v21 = vadd.f32 %v2462_v19, %v1083_v18 }
 0x3f1   : > { %v2466_v25 = vpop.eup %2465  ;;  %v1089_v31 = vadd.f32 %v2464_v20, %v1081_v27  ;;  %v1360_v20 = vpop.f32.mrf.mxu0 }
 0x3f2   : > { %2283 = vmatprep.subr.mxu1 %v1091_v21  ;;  %v1090_v26 = vadd.f32 %v2466_v25, %v1082_v24  ;;  %v2468_v29 = vpop.eup %2467  ;;  %v1272_v52 = vmul.f32 0.9, %v1091_v21 }
 0x3f3   : > { %2284 = vmatpush3.msra.mxu1 %v1091_v21  ;;  %v1088_v33 = vadd.f32 %v2468_v29, %v1080_v32  ;;  %v1270_v59 = vmul.f32 0.9, %v1089_v31 }
 0x3f4   : > { %2285 = vmatprep.subr.mxu1 %v1090_v26  ;;  %v1271_v56 = vmul.f32 0.9, %v1090_v26 }
 0x3f5   : > { %2286 = vmatpush3.msra.mxu1 %v1090_v26  ;;  %v1269_v62 = vmul.f32 0.9, %v1088_v33 }
 0x3f6   : > { %2287 = vmatprep.subr.mxu1 %v1089_v31 }
 0x3f7   : > { %2288 = vmatpush3.msra.mxu1 %v1089_v31 }
 0x3f8   : > { %2289 = vmatprep.subr.mxu1 %v1088_v33 }
 0x3f9   : > { %2290 = vmatpush3.msra.mxu1 %v1088_v33 }
 0x3fa   : > { %2292 = vmatmul.mubr.msk.f32.vlgmr.msra.gmra.mxu1 %vm411_vm1, %v2931_v10 }
 0x3fb   : > { %2294 = vmatprep.mubr.msk.f32.mxu1 %vm411_vm1, %v2943_v12 }
 0x3fe   : > { %2295 = vmatmul.mubr.msk.f32.gmra.mxu1 %vm411_vm1, %v2956_v13 }
 0x3ff   : > { %2315 = vmatprep.mubr.msk.f32.mxu1 %vm411_vm1, %v2915_v8 }
 0x4ba   : > { %v2293_v38 = vpop.f32.mrf.mxu1 }
 0x4bb   : > { %v1252_v39 = vadd.f32 %v2293_v38, %v2279_v36 }
 0x4bc   : > { %v1246_v41 = vpop.f32.mrf.mxu1 }
 0x4bd   : > { %v1247_v43 = vadd.f32 %v1246_v41, %v1161_v37  ;;  %v1266_v45 = vadd.f32 %v1252_v39, %v2974_v22  ;;  %v2052_v41 = vld [vmem:[%s2880_s16 + $0x78] sm:$0xff] }
 0x4be   : > { %v2296_v42 = vpop.f32.mrf.mxu1  ;;  %2345 = vmatprep.subr.mxu0 %v2052_v41 }
 0x4bf   : > { %v1262_v44 = vadd.f32 %v2296_v42, %v2282_v40  ;;  %v1265_v50 = vadd.f32 %v1247_v43, %v2979_v28  ;;  %2346 = vmatpush3.msra.mxu0 %v2052_v41  ;;  %v2051_v42 = vld [vmem:[%s2880_s16 + $0x70] sm:$0xff]  ;;  %v2327_v43 = vpop.f32.mrf.mxu0 }
 0x4c0   : > { %v1256_v47 = vpop.f32.mrf.mxu1  ;;  %2347 = vmatprep.subr.mxu0 %v2051_v42 }
 0x4c1   : > { %v1268_v48 = vadd.f32 %v1262_v44, %v2976_v23  ;;  %v1257_v49 = vadd.f32 %v1256_v47, %v1171_v46  ;;  %2348 = vmatpush3.msra.mxu0 %v2051_v42  ;;  %v1539_v44 = vpop.f32.mrf.mxu0 }
 0x4c2   : > { %2350 = vmatmul.mubr.msk.f32.vlgmr.msra.gmra.mxu0 %vm313_vm0, %v2909_v6 }
 0x4c3   : > { %2469 = vtanh.f32 %v1268_v48  ;;  %v1267_v51 = vadd.f32 %v1257_v49, %v2981_v30  ;;  %2352 = vmatprep.mubr.msk.f32.mxu0 %vm313_vm0, %v2923_v9 }
 0x4c4   : > { %2471 = vtanh.f32 %v1266_v45 }
 0x4c5   : > { %2473 = vtanh.f32 %v1267_v51 }
 0x4c6   : > { %2475 = vtanh.f32 %v1265_v50  ;;  %2353 = vmatmul.mubr.msk.f32.gmra.mxu0 %vm313_vm0, %v2938_v11 }
 0x4d0   : > { %v2470_v53 = vpop.eup %2469 }
 0x4d1   : > { %v2472_v54 = vpop.eup %2471  ;;  %v1280_v55 = vadd.f32 %v2470_v53, %v1272_v52 }
 0x4d2   : > { %v2474_v57 = vpop.eup %2473  ;;  %v1278_v61 = vadd.f32 %v2472_v54, %v1270_v59 }
 0x4d3   : > { %2307 = vmatprep.subr.mxu1 %v1280_v55  ;;  %v1279_v58 = vadd.f32 %v2474_v57, %v1271_v56  ;;  %v2476_v60 = vpop.eup %2475  ;;  %v1461_v27 = vmul.f32 0.9, %v1280_v55 }
 0x4d4   : > { %2308 = vmatpush3.msra.mxu1 %v1280_v55  ;;  %v1277_v63 = vadd.f32 %v2476_v60, %v1269_v62  ;;  %v1459_v36 = vmul.f32 0.9, %v1278_v61 }
 0x4d5   : > { %2309 = vmatprep.subr.mxu1 %v1279_v58  ;;  %v1460_v33 = vmul.f32 0.9, %v1279_v58 }
 0x4d6   : > { %2310 = vmatpush3.msra.mxu1 %v1279_v58  ;;  %v1458_v39 = vmul.f32 0.9, %v1277_v63 }
 0x4d7   : > { %2311 = vmatprep.subr.mxu1 %v1278_v61 }
 0x4d8   : > { %2312 = vmatpush3.msra.mxu1 %v1278_v61 }
 0x4d9   : > { %2313 = vmatprep.subr.mxu1 %v1277_v63 }
 0x4da   : > { %2314 = vmatpush3.msra.mxu1 %v1277_v63 }
 0x4db   : > { %2316 = vmatmul.mubr.msk.f32.vlgmr.msra.gmra.mxu1 %vm411_vm1, %v2931_v10 }
 0x4dc   : > { %2318 = vmatprep.mubr.msk.f32.mxu1 %vm411_vm1, %v2943_v12 }
 0x4df   : > { %2319 = vmatmul.mubr.msk.f32.gmra.mxu1 %vm411_vm1, %v2956_v13 }
 0x4e0   : > { %2339 = vmatprep.mubr.msk.f32.mxu1 %vm411_vm1, %v2915_v8 }
 0x59b   : > { %v2317_v4 = vpop.f32.mrf.mxu1 }
 0x59c   : > { %v1441_v7 = vadd.f32 %v2317_v4, %v2303_v2 }
 0x59d   : > { %v1435_v15 = vpop.f32.mrf.mxu1 }
 0x59e   : > { %v1436_v17 = vadd.f32 %v1435_v15, %v1350_v3  ;;  %v1455_v19 = vadd.f32 %v1441_v7, %v2974_v22 }
 0x59f   : > { %v2320_v16 = vpop.f32.mrf.mxu1 }
 0x5a0   : > { %v1451_v18 = vadd.f32 %v2320_v16, %v2306_v14  ;;  %v1454_v26 = vadd.f32 %v1436_v17, %v2979_v28 }
 0x5a1   : > { %v1445_v21 = vpop.f32.mrf.mxu1 }
 0x5a2   : > { %v1457_v24 = vadd.f32 %v1451_v18, %v2976_v23  ;;  %v1446_v25 = vadd.f32 %v1445_v21, %v1360_v20 }
 0x5a4   : > { %2477 = vtanh.f32 %v1457_v24  ;;  %v1456_v5 = vadd.f32 %v1446_v25, %v2981_v30 }
 0x5a5   : > { %2479 = vtanh.f32 %v1455_v19 }
 0x5a6   : > { %2481 = vtanh.f32 %v1456_v5 }
 0x5a7   : > { %2483 = vtanh.f32 %v1454_v26 }
 0x5b1   : > { %v2478_v29 = vpop.eup %2477 }
 0x5b2   : > { %v2480_v31 = vpop.eup %2479  ;;  %v1469_v32 = vadd.f32 %v2478_v29, %v1461_v27 }
 0x5b3   : > { %v2482_v34 = vpop.eup %2481  ;;  %v1467_v38 = vadd.f32 %v2480_v31, %v1459_v36 }
 0x5b4   : > { %2331 = vmatprep.subr.mxu1 %v1469_v32  ;;  %v1468_v35 = vadd.f32 %v2482_v34, %v1460_v33  ;;  %v2484_v37 = vpop.eup %2483  ;;  %v1650_v55 = vmul.f32 0.9, %v1469_v32 }
 0x5b5   : > { %2332 = vmatpush3.msra.mxu1 %v1469_v32  ;;  %v1466_v40 = vadd.f32 %v2484_v37, %v1458_v39  ;;  %v1648_v62 = vmul.f32 0.9, %v1467_v38 }
 0x5b6   : > { %2333 = vmatprep.subr.mxu1 %v1468_v35  ;;  %v1649_v59 = vmul.f32 0.9, %v1468_v35 }
 0x5b7   : > { %2334 = vmatpush3.msra.mxu1 %v1468_v35  ;;  %v1647_v1 = vmul.f32 0.9, %v1466_v40 }
 0x5b8   : > { %2335 = vmatprep.subr.mxu1 %v1467_v38 }
 0x5b9   : > { %2336 = vmatpush3.msra.mxu1 %v1467_v38 }
 0x5ba   : > { %2337 = vmatprep.subr.mxu1 %v1466_v40 }
 0x5bb   : > { %2338 = vmatpush3.msra.mxu1 %v1466_v40 }
 0x5bc   : > { %2340 = vmatmul.mubr.msk.f32.vlgmr.msra.gmra.mxu1 %vm411_vm1, %v2931_v10 }
 0x5bd   : > { %2342 = vmatprep.mubr.msk.f32.mxu1 %vm411_vm1, %v2943_v12 }
 0x5c0   : > { %2343 = vmatmul.mubr.msk.f32.gmra.mxu1 %vm411_vm1, %v2956_v13 }
 0x5c1   : > { %2363 = vmatprep.mubr.msk.f32.mxu1 %vm411_vm1, %v2915_v8  ;;  %v2330_v8 = vpop.f32.mrf.mxu0 }
 0x5c3   : > { %v1549_v52 = vpop.f32.mrf.mxu0 }
 0x5c5   : > { %v2351_v3 = vpop.f32.mrf.mxu0 }
 0x5c7   : > { %v1728_v4 = vpop.f32.mrf.mxu0 }
 0x5c9   : > { %v2354_v16 = vpop.f32.mrf.mxu0 }
 0x67c   : > { %v2341_v45 = vpop.f32.mrf.mxu1 }
 0x67d   : > { %v1630_v46 = vadd.f32 %v2341_v45, %v2327_v43 }
 0x67e   : > { %v1624_v47 = vpop.f32.mrf.mxu1 }
 0x67f   : > { %v1625_v49 = vadd.f32 %v1624_v47, %v1539_v44  ;;  %v1644_v51 = vadd.f32 %v1630_v46, %v2974_v22 }
 0x680   : > { %v2344_v48 = vpop.f32.mrf.mxu1 }
 0x681   : > { %v1640_v50 = vadd.f32 %v2344_v48, %v2330_v8  ;;  %v1643_v9 = vadd.f32 %v1625_v49, %v2979_v28 }
 0x682   : > { %v1634_v53 = vpop.f32.mrf.mxu1 }
 0x683   : > { %v1646_v6 = vadd.f32 %v1640_v50, %v2976_v23  ;;  %v1635_v54 = vadd.f32 %v1634_v53, %v1549_v52 }
 0x685   : > { %2485 = vtanh.f32 %v1646_v6  ;;  %v1645_v11 = vadd.f32 %v1635_v54, %v2981_v30 }
 0x686   : > { %2487 = vtanh.f32 %v1644_v51 }
 0x687   : > { %2489 = vtanh.f32 %v1645_v11 }
 0x688   : > { %2491 = vtanh.f32 %v1643_v9 }
 0x692   : > { %v2486_v56 = vpop.eup %2485 }
 0x693   : > { %v2488_v57 = vpop.eup %2487  ;;  %v1658_v58 = vadd.f32 %v2486_v56, %v1650_v55 }
 0x694   : > { %v2490_v60 = vpop.eup %2489  ;;  %v1656_v0 = vadd.f32 %v2488_v57, %v1648_v62 }
 0x695   : > { %2355 = vmatprep.subr.mxu1 %v1658_v58  ;;  %v1657_v61 = vadd.f32 %v2490_v60, %v1649_v59  ;;  %v2492_v63 = vpop.eup %2491 }
 0x696   : > { %2356 = vmatpush3.msra.mxu1 %v1658_v58  ;;  %v1655_v2 = vadd.f32 %v2492_v63, %v1647_v1  ;;  %v1837_v26 = vmul.f32 0.9, %v1656_v0 }
 0x697   : > { %2357 = vmatprep.subr.mxu1 %v1657_v61  ;;  %v1838_v32 = vmul.f32 0.9, %v1657_v61 }
 0x698   : > { %2358 = vmatpush3.msra.mxu1 %v1657_v61  ;;  %v1836_v5 = vmul.f32 0.9, %v1655_v2 }
 0x699   : > { %2359 = vmatprep.subr.mxu1 %v1656_v0 }
 0x69a   : > { %2360 = vmatpush3.msra.mxu1 %v1656_v0 }
 0x69b   : > { %2361 = vmatprep.subr.mxu1 %v1655_v2 }
 0x69c   : > { %2362 = vmatpush3.msra.mxu1 %v1655_v2 }
 0x69d   : > { %2364 = vmatmul.mubr.msk.f32.vlgmr.msra.gmra.mxu1 %vm411_vm1, %v2931_v10 }
 0x69e   : > { %2366 = vmatprep.mubr.msk.f32.mxu1 %vm411_vm1, %v2943_v12  ;;  %v1738_v12 = vpop.f32.mrf.mxu0 }
 0x6a1   : > { %2367 = vmatmul.mubr.msk.f32.gmra.mxu1 %vm411_vm1, %v2956_v13 }
 0x75d   : > { %v2365_v7 = vpop.f32.mrf.mxu1 }
 0x75e   : > { %v1819_v14 = vadd.f32 %v2365_v7, %v2351_v3 }
 0x75f   : > { %v1813_v15 = vpop.f32.mrf.mxu1 }
 0x760   : > { %v1833_v17 = vadd.f32 %v1819_v14, %v2974_v22  ;;  %v1814_v18 = vadd.f32 %v1813_v15, %v1728_v4 }
 0x761   : > { %v2368_v19 = vpop.f32.mrf.mxu1 }
 0x762   : > { %2493 = vtanh.f32 %v1833_v17  ;;  %v1832_v10 = vadd.f32 %v1814_v18, %v2979_v28  ;;  %v1829_v20 = vadd.f32 %v2368_v19, %v2354_v16  ;;  %v1839_v28 = vmul.f32 0.9, %v1658_v58 }
 0x763   : > { %v1823_v21 = vpop.f32.mrf.mxu1 }
 0x764   : > { %2495 = vtanh.f32 %v1832_v10  ;;  %v1835_v13 = vadd.f32 %v1829_v20, %v2976_v23  ;;  %v1824_v24 = vadd.f32 %v1823_v21, %v1738_v12 }
 0x766   : > { %2497 = vtanh.f32 %v1835_v13  ;;  %v1834_v25 = vadd.f32 %v1824_v24, %v2981_v30 }
 0x768   : > { %2499 = vtanh.f32 %v1834_v25 }
 0x76f   : > { %v2494_v22 = vpop.eup %2493 }
 0x770   : > { %v1845_v27 = vadd.f32 %v2494_v22, %v1837_v26 }
 0x771   : > { %v2496_v29 = vpop.eup %2495 }
 0x772   : > { %1849 = vst [vmem:[%s294_s10 + $0x8] sm:$0xff] %v1845_v27  ;;  %v1844_v31 = vadd.f32 %v2496_v29, %v1836_v5 }
 0x773   : > { %v2498_v23 = vpop.eup %2497 }
 0x774   : > { %1848 = vst [vmem:[%s294_s10] sm:$0xff] %v1844_v31  ;;  %v1847_v33 = vadd.f32 %v2498_v23, %v1839_v28 }
 0x775   : > { %v2500_v30 = vpop.eup %2499 }
 0x776   : > { %1851 = vst [vmem:[%s294_s10 + $0x18] sm:$0xff] %v1847_v33  ;;  %v1846_v34 = vadd.f32 %v2500_v30, %v1838_v32 }
 0x778   : > { %1850 = vst [vmem:[%s294_s10 + $0x10] sm:$0xff] %v1846_v34 }
 0x779   : > { %2596 = shalt.err (!%p2593_p12)
}
 0x77a   : > { %s2597_s12 = scalar_lea.hbm %s3135_s4, 512  ;;  %s2601_s15 = scalar_lea.hbm %s3185_s5, 1024 }
 0x77b   : > { %p2598_p1 = scmp.ne.s32.totalorder %s3135_s4, %s2597_s12  ;;  %p2602_p3 = scmp.lt.s32.totalorder %s3135_s4, %s3185_s5 }
 0x77c   : > { %p2603_p11 = scmp.lt.s32.totalorder %s2601_s15, %s2597_s12 }
 0x77d   : > { %p2599_p0 = pnand %p2598_p1, %p3216_p6 }
 0x77e   : > { %p2604_p2 = por %p2603_p11, %p2602_p3 }
 0x77f   : > { %p2600_p13 = pneg %p2599_p0 }
 0x781   : > { %p2605_p4 = pnand %p2604_p2, %p2600_p13 }
 0x783   : > { %2608 = shalt.err (!%p2605_p4)
}
 0x784   : > { %s2664_s0 = smov 128   ;;  %s2665_s27 = smov 256  }
 0x785   : > { %s2666_s13 = smov 8  }
 0x786   : > { %2377 = dma.vmem_to_hbm [thread:$0]  (%p3216_p6), %s3137_s9, 512, %s3135_s4, %s1853_s22, %s2664_s0, %s2665_s27, %s2666_s13  }
 0x787 PF: > { %s3217_s6 = sld [smem:[#allocation16_spill]]  ;;  %s1880_s17 = sand.u32 1, %s2643_s18  }
 0x788   : > { %p3219_p8 = scmp.ge.s32.totalorder %s2655_s21, 2  ;;  %s1881_s7 = scalar_lea.sflag [#allocation4], %s1880_s17 }
 0x78d   : > { %p3218_p7 = scmp.ne.s32.totalorder %s3217_s6, 0 }
 0x78f   : > { %p2391_p9 = pnand %p3219_p8, %p3218_p7 }
 0x791   : > { %p2392_p10 = pneg %p2391_p9 }
 0x793   : > { %2638 = dma.done.wait (%p2392_p10), %s1881_s7, 512  }
 0x794   : > { %2640 = vsyncadd (%p2392_p10), %s1881_s7, 4294966784  ;;  %s3220_s21 = sld [smem:[#allocation14_spill]]  ;;  %s3223_s18 = smov %s2647_s19 }
 0x795   : > { %s3221_s10 = sld [smem:[#allocation13_spill]] }
 0x796   : > { %s3222_s20 = sld [smem:[#allocation15_spill]] }
 0x79a   : > { %p21_p5 = scmp.ge.s32.totalorder %s3220_s21, 4  }
 0x79b   : > { %s3224_s19 = smov %s3221_s10 }
 0x79c   :  { %23 = sbr.rel (!%p21_p5) target bundleno = 10 (0xa), region = 109 }
 0x7a1   :  { %1886 = vsyncpa [#allocation3], 1 }
 0x7a2   :  { %1888 = vsyncpa [#allocation3 + $0x1], 1 }
 0x7a3   :  { %1889 = vsyncpa [#allocation6], 1 }
 0x7a4   :  { %1891 = vsyncpa [#allocation6 + $0x1], 1 }
 0x7a5   :  { %1892 = vsyncpa [#allocation4], 1 }
 0x7a6   :  { %1894 = vsyncpa [#allocation4 + $0x1], 1 }

</bundles_post_ra>
